<compile_context>
chip_gen: v5e
topology: v5e:2x2
jax: 0.10.0
libtpu: 0.0.40
codegen_flags: <defaults>
</compile_context>

<pallas_src>
import functools

import jax
import jax.numpy as jnp
from jax.experimental import pallas as pl
from jax.experimental.pallas import tpu as pltpu


def _fuse_kernel(w_ref,     # SMEM (2,)               normalized fuse weights
                 x_ref,     # (nb*H, W*Cp)  f32
                 y_ref,     # (nb*H, W*8)   f32
                 tup_ref,   # (3, W*8,  W*Cp) bf16     conv_up bands (w[1] folded in)
                 tr1_ref,   # (3, W*Cp, W*Cp) bf16     res conv1 (BN1 scale folded in)
                 b1_ref,    # (1, W*Cp)     f32        BN1 bias (tiled over W)
                 tr2_ref,   # (3, W*Cp, W*Cp) bf16     res conv2 (BN2 scale folded in)
                 b2_ref,    # (1, W*Cp)     f32        BN2 bias (tiled over W)
                 o_ref,     # (nb*H, W*Cp)  f32
                 *, img_h):
    M = x_ref.shape[0]                                           # nb * H rows

    # Per-image height-halo masks (row index within each image).  H=16 is a power of
    # two for the shipped shapes -> bitwise AND; general case uses remainder.
    row = jax.lax.broadcasted_iota(jnp.int32, (M, 1), 0)
    if img_h & (img_h - 1) == 0:
        h = row & (img_h - 1)
    else:
        h = row % img_h
    top = h == 0                    # first row of an image: nothing above (pad=0)
    bot = h == img_h - 1            # last row of an image: nothing below (pad=0)

    def conv3x3(rows_f32, band_ref):
        # rows_f32: (M, W*Cin) f32 lane-flattened rows; band_ref: (3, W*Cin, W*Cout).
        # Height halo: roll on the sublane axis (XLU) + per-image boundary mask.
        # Width halo (pad=1) is baked into the banded weight matrices.
        up = jnp.where(top, 0.0, pltpu.roll(rows_f32, 1, axis=0))       # in[h-1]
        dn = jnp.where(bot, 0.0, pltpu.roll(rows_f32, M - 1, axis=0))   # in[h+1]
        acc = jnp.dot(up.astype(jnp.bfloat16), band_ref[0],
                      preferred_element_type=jnp.float32)
        acc = acc + jnp.dot(rows_f32.astype(jnp.bfloat16), band_ref[1],
                            preferred_element_type=jnp.float32)
        acc = acc + jnp.dot(dn.astype(jnp.bfloat16), band_ref[2],
                            preferred_element_type=jnp.float32)
        return acc

    w0 = w_ref[0]
    x = x_ref[...]
    y_up = conv3x3(y_ref[...], tup_ref)                 # w[1] already folded into tup
    fused = jnp.maximum(w0 * x + y_up, 0.0)

    # BasicBlock: conv+BN(folded) -> relu -> conv+BN(folded) -> +residual -> relu
    t = jnp.maximum(conv3x3(fused, tr1_ref) + b1_ref[...], 0.0)
    t2 = conv3x3(t, tr2_ref) + b2_ref[...]
    o_ref[...] = jnp.maximum(t2 + fused, 0.0)


def _band_weights(w_hwio, W):
    """(3, 3, Cin, Cout) conv kernel -> (3, W*Cin, W*Cout) banded matmul weights.

    band[kh][wi*Cin + ci, wo*Cout + co] = k[kh, wi-wo+1, ci, co] when the width tap
    wi-wo+1 lies in [0, 2]; zero otherwise (this implements width pad=1).
    """
    cin, cout = w_hwio.shape[2], w_hwio.shape[3]
    wi = jnp.arange(W)[:, None]                 # input column
    wo = jnp.arange(W)[None, :]                 # output column
    dw = wi - wo + 1                            # width tap index, valid in [0, 2]
    valid = (dw >= 0) & (dw <= 2)
    dw_c = jnp.clip(dw, 0, 2)
    bands = []
    for kh in range(3):
        blk = w_hwio[kh][dw_c]                  # (Wi, Wo, Cin, Cout)
        blk = jnp.where(valid[:, :, None, None], blk, 0.0)
        blk = jnp.transpose(blk, (0, 2, 1, 3))  # (Wi, Cin, Wo, Cout)
        bands.append(blk.reshape(W * cin, W * cout))
    return jnp.stack(bands, axis=0)             # (3, W*Cin, W*Cout)


@jax.jit
def channel_fuse_block(x_nchw, y_nchw, params):
    """x_nchw: (N, planes, H, W) f32, y_nchw: (N, 8, H, W) f32."""
    N, Cp, H, W = x_nchw.shape
    assert y_nchw.shape == (N, 8, H, W)
    # Lane-dense layout requirements for the shipped shapes (W*8 = W*Cp = 128, H=16).
    assert (W * 8) % 128 == 0 and (W * Cp) % 128 == 0 and H % 8 == 0

    # --- batching: nb images per grid step so the matmul M-dim is ~256 rows ---------
    rows_target = 256                               # one v6e/v7x MXU pass, two on v5e
    nb = max(1, min(rows_target // H, -(-N // 2)))  # keep >=2 grid steps when N >= 2
    grid_n = -(-N // nb)
    n_pad = grid_n * nb

    # Lane-dense (rows, W*C) slabs; single relayout per tensor at the boundary.
    x_s = jnp.transpose(x_nchw, (0, 2, 3, 1)).astype(jnp.float32).reshape(N * H, W * Cp)
    y_s = jnp.transpose(y_nchw, (0, 2, 3, 1)).astype(jnp.float32).reshape(N * H, W * 8)
    pad_rows = (n_pad - N) * H
    if pad_rows:
        x_s = jnp.pad(x_s, ((0, pad_rows), (0, 0)))
        y_s = jnp.pad(y_s, ((0, pad_rows), (0, 0)))

    rs_w = jax.nn.relu(params["rs_w"])
    weight = (rs_w / (jnp.sum(rs_w) + 1e-4)).astype(jnp.float32)     # (2,)

    # Fold eval-mode BN into per-out-channel scale/bias; scale goes into the weights.
    bn_eps = 1e-5
    s1 = params["bn1_gamma"] * jax.lax.rsqrt(params["bn1_var"] + bn_eps)
    b1 = params["bn1_beta"] - params["bn1_mean"] * s1
    s2 = params["bn2_gamma"] * jax.lax.rsqrt(params["bn2_var"] + bn_eps)
    b2 = params["bn2_beta"] - params["bn2_mean"] * s2

    # PyTorch conv weight layout (out, in, kh, kw) -> HWIO; fold fuse scalar / BN scale.
    w_up = jnp.transpose(params["w_up"], (2, 3, 1, 0)) * weight[1]   # w[1] folded
    w_r1 = jnp.transpose(params["w_r1"], (2, 3, 1, 0)) * s1          # BN1 scale folded
    w_r2 = jnp.transpose(params["w_r2"], (2, 3, 1, 0)) * s2          # BN2 scale folded

    # bf16 MXU operands (f32 accumulation in-kernel); biases stay f32.
    t_up = _band_weights(w_up, W).astype(jnp.bfloat16)               # (3, W*8,  W*Cp)
    t_r1 = _band_weights(w_r1, W).astype(jnp.bfloat16)               # (3, W*Cp, W*Cp)
    t_r2 = _band_weights(w_r2, W).astype(jnp.bfloat16)
    b1w = jnp.tile(b1, W).reshape(1, W * Cp).astype(jnp.float32)     # lane idx w*Cp+c
    b2w = jnp.tile(b2, W).reshape(1, W * Cp).astype(jnp.float32)

    const = lambda a: pl.BlockSpec(a.shape, lambda n: (0,) * a.ndim)
    kernel = functools.partial(_fuse_kernel, img_h=H)

    out = pl.pallas_call(
        kernel,
        out_shape=jax.ShapeDtypeStruct((n_pad * H, W * Cp), jnp.float32),
        grid=(grid_n,),
        in_specs=[
            pl.BlockSpec(memory_space=pltpu.MemorySpace.SMEM),        # weight (2,)
            pl.BlockSpec((nb * H, W * Cp), lambda n: (n, 0)),         # x slab
            pl.BlockSpec((nb * H, W * 8), lambda n: (n, 0)),          # y slab
            const(t_up), const(t_r1), const(b1w),
            const(t_r2), const(b2w),
        ],
        out_specs=pl.BlockSpec((nb * H, W * Cp), lambda n: (n, 0)),
        compiler_params=pltpu.CompilerParams(
            dimension_semantics=("parallel",),
            vmem_limit_bytes=32 * 1024 * 1024),
    )(weight, x_s, y_s, t_up, t_r1, b1w, t_r2, b2w)

    out = out[: N * H].reshape(N, H, W, Cp)
    return jnp.transpose(out, (0, 3, 1, 2))                          # back to NCHW


def init_params(key, planes):
    ks = jax.random.split(key, 8)
    return {
        "rs_w": jnp.ones((2,), jnp.float32),
        "w_up": 0.1 * jax.random.normal(ks[0], (planes, 8, 3, 3), jnp.float32),
        "w_r1": 0.1 * jax.random.normal(ks[1], (planes, planes, 3, 3), jnp.float32),
        "w_r2": 0.1 * jax.random.normal(ks[2], (planes, planes, 3, 3), jnp.float32),
        "bn1_gamma": 1.0 + 0.05 * jax.random.normal(ks[3], (planes,), jnp.float32),
        "bn1_beta": 0.05 * jax.random.normal(ks[4], (planes,), jnp.float32),
        "bn1_mean": jnp.zeros((planes,), jnp.float32),
        "bn1_var": jnp.ones((planes,), jnp.float32),
        "bn2_gamma": 1.0 + 0.05 * jax.random.normal(ks[5], (planes,), jnp.float32),
        "bn2_beta": 0.05 * jax.random.normal(ks[6], (planes,), jnp.float32),
        "bn2_mean": jnp.zeros((planes,), jnp.float32),
        "bn2_var": jnp.ones((planes,), jnp.float32),
    }


def _reference(x_nchw, y_nchw, params):
    """Plain-XLA f32 reference of the same forward pass (eval-mode BN)."""
    dn = ("NHWC", "HWIO", "NHWC")
    conv = lambda v, w: jax.lax.conv_general_dilated(
        v, w, window_strides=(1, 1), padding="SAME", dimension_numbers=dn)
    x = jnp.transpose(x_nchw, (0, 2, 3, 1)).astype(jnp.float32)
    y = jnp.transpose(y_nchw, (0, 2, 3, 1)).astype(jnp.float32)
    rs_w = jax.nn.relu(params["rs_w"])
    wgt = rs_w / (jnp.sum(rs_w) + 1e-4)
    bn_eps = 1e-5
    s1 = params["bn1_gamma"] / jnp.sqrt(params["bn1_var"] + bn_eps)
    b1 = params["bn1_beta"] - params["bn1_mean"] * s1
    s2 = params["bn2_gamma"] / jnp.sqrt(params["bn2_var"] + bn_eps)
    b2 = params["bn2_beta"] - params["bn2_mean"] * s2
    w_up = jnp.transpose(params["w_up"], (2, 3, 1, 0))
    w_r1 = jnp.transpose(params["w_r1"], (2, 3, 1, 0))
    w_r2 = jnp.transpose(params["w_r2"], (2, 3, 1, 0))
    y_up = conv(y, w_up)
    out = jax.nn.relu(wgt[0] * x + wgt[1] * y_up)
    t = jax.nn.relu(conv(out, w_r1) * s1 + b1)
    t2 = conv(t, w_r2) * s2 + b2
    res = jax.nn.relu(t2 + out)
    return jnp.transpose(res, (0, 3, 1, 2))


if __name__ == "__main__":
    N, planes, H, W = 2, 8, 16, 16
    key = jax.random.PRNGKey(0)
    kx, ky, kp = jax.random.split(key, 3)

    x = jax.random.normal(kx, (N, planes, H, W), jnp.float32)   # first input
    y = jax.random.normal(ky, (N, 8, H, W), jnp.float32)        # second input (8 ch)
    params = init_params(kp, planes)

    out = channel_fuse_block(x, y, params)
    jax.block_until_ready(out)
    assert out.shape == (N, planes, H, W)

    ref = _reference(x, y, params)
    err = float(jnp.max(jnp.abs(out - ref)))
    # bf16 MXU operands (f32 accumulation) vs f32 reference: expected max-abs err ~1e-2.
    assert err < 8e-2, f"mismatch vs reference (bf16 MXU path): max abs err {err}"

    print("KERNEL_OK")
</pallas_src>

<mosaic_0001>
module attributes {stable_mosaic.version = 11 : i64} {
  func.func @_fuse_kernel(%arg0: i32, %arg1: memref<2xf32, #tpu.memory_space<smem>>, %arg2: memref<16x128xf32, #tpu.memory_space<vmem>>, %arg3: memref<16x128xf32, #tpu.memory_space<vmem>>, %arg4: memref<3x128x128xbf16, #tpu.memory_space<vmem>>, %arg5: memref<3x128x128xbf16, #tpu.memory_space<vmem>>, %arg6: memref<1x128xf32, #tpu.memory_space<vmem>>, %arg7: memref<3x128x128xbf16, #tpu.memory_space<vmem>>, %arg8: memref<1x128xf32, #tpu.memory_space<vmem>>, %arg9: memref<16x128xf32, #tpu.memory_space<vmem>>) attributes {dimension_semantics = [#tpu.dimension_semantics<parallel>], iteration_bounds = array<i64: 2>, scalar_prefetch = 0 : i64, scratch_operands = 0 : i64, tpu.core_type = #tpu.core_type<tc>, window_params = [{transform_indices = @transform_0, window_bounds = array<i64: 2>}, {transform_indices = @transform_1, window_bounds = array<i64: 16, 128>}, {transform_indices = @transform_2, window_bounds = array<i64: 16, 128>}, {pipeline_mode = #tpu.pipeline_mode<synchronous>, transform_indices = @transform_3, window_bounds = array<i64: 3, 128, 128>}, {pipeline_mode = #tpu.pipeline_mode<synchronous>, transform_indices = @transform_4, window_bounds = array<i64: 3, 128, 128>}, {pipeline_mode = #tpu.pipeline_mode<synchronous>, transform_indices = @transform_5, window_bounds = array<i64: 1, 128>}, {pipeline_mode = #tpu.pipeline_mode<synchronous>, transform_indices = @transform_6, window_bounds = array<i64: 3, 128, 128>}, {pipeline_mode = #tpu.pipeline_mode<synchronous>, transform_indices = @transform_7, window_bounds = array<i64: 1, 128>}, {transform_indices = @transform_8, window_bounds = array<i64: 16, 128>}]} {
    %0 = tpu.iota {dimensions = array<i32: 0>} : vector<16x1xi32>
    %c15_i32 = arith.constant 15 : i32
    %1 = vector.broadcast %c15_i32 : i32 to vector<16x1xi32>
    %2 = arith.andi %0, %1 : vector<16x1xi32>
    %c0_i32 = arith.constant 0 : i32
    %3 = vector.broadcast %c0_i32 : i32 to vector<16x1xi32>
    %4 = arith.cmpi eq, %2, %3 : vector<16x1xi32>
    %c15_i32_0 = arith.constant 15 : i32
    %5 = vector.broadcast %c15_i32_0 : i32 to vector<16x1xi32>
    %6 = arith.cmpi eq, %2, %5 : vector<16x1xi32>
    %c0 = arith.constant 0 : index
    %7 = memref.load %arg1[%c0] : memref<2xf32, #tpu.memory_space<smem>>
    %c0_1 = arith.constant 0 : index
    %c0_2 = arith.constant 0 : index
    %8 = vector.load %arg2[%c0_1, %c0_2] : memref<16x128xf32, #tpu.memory_space<vmem>>, vector<16x128xf32>
    %c0_3 = arith.constant 0 : index
    %c0_4 = arith.constant 0 : index
    %9 = vector.load %arg3[%c0_3, %c0_4] : memref<16x128xf32, #tpu.memory_space<vmem>>, vector<16x128xf32>
    %c1_i32 = arith.constant 1 : i32
    %10 = tpu.dynamic_rotate %9 by %c1_i32 dim 0 : vector<16x128xf32>, i32 -> vector<16x128xf32>
    %cst = arith.constant 0.000000e+00 : f32
    %11 = vector.shape_cast %4 : vector<16x1xi1> to vector<16x1xi1>
    %12 = vector.broadcast %11 : vector<16x1xi1> to vector<16x128xi1>
    %13 = vector.broadcast %cst : f32 to vector<16x128xf32>
    %14 = arith.select %12, %13, %10 : vector<16x128xi1>, vector<16x128xf32>
    %c15_i32_5 = arith.constant 15 : i32
    %15 = tpu.dynamic_rotate %9 by %c15_i32_5 dim 0 : vector<16x128xf32>, i32 -> vector<16x128xf32>
    %cst_6 = arith.constant 0.000000e+00 : f32
    %16 = vector.shape_cast %6 : vector<16x1xi1> to vector<16x1xi1>
    %17 = vector.broadcast %16 : vector<16x1xi1> to vector<16x128xi1>
    %18 = vector.broadcast %cst_6 : f32 to vector<16x128xf32>
    %19 = arith.select %17, %18, %15 : vector<16x128xi1>, vector<16x128xf32>
    %20 = arith.truncf %14 : vector<16x128xf32> to vector<16x128xbf16>
    %c0_7 = arith.constant 0 : index
    %c0_8 = arith.constant 0 : index
    %c0_9 = arith.constant 0 : index
    %21 = vector.load %arg4[%c0_7, %c0_8, %c0_9] : memref<3x128x128xbf16, #tpu.memory_space<vmem>>, vector<1x128x128xbf16>
    %22 = vector.shape_cast %21 : vector<1x128x128xbf16> to vector<128x128xbf16>
    %cst_10 = arith.constant dense<0.000000e+00> : vector<16x128xf32>
    %23 = tpu.matmul %20, %22, %cst_10 {dimension_numbers = #tpu.dot_dimension_numbers<[1], [0], [0], [1], [0, 0, 1, 1], [], []>} : vector<16x128xbf16>, vector<128x128xbf16>, vector<16x128xf32> -> vector<16x128xf32>
    %24 = arith.truncf %9 : vector<16x128xf32> to vector<16x128xbf16>
    %c1 = arith.constant 1 : index
    %c0_11 = arith.constant 0 : index
    %c0_12 = arith.constant 0 : index
    %25 = vector.load %arg4[%c1, %c0_11, %c0_12] : memref<3x128x128xbf16, #tpu.memory_space<vmem>>, vector<1x128x128xbf16>
    %26 = vector.shape_cast %25 : vector<1x128x128xbf16> to vector<128x128xbf16>
    %cst_13 = arith.constant dense<0.000000e+00> : vector<16x128xf32>
    %27 = tpu.matmul %24, %26, %cst_13 {dimension_numbers = #tpu.dot_dimension_numbers<[1], [0], [0], [1], [0, 0, 1, 1], [], []>} : vector<16x128xbf16>, vector<128x128xbf16>, vector<16x128xf32> -> vector<16x128xf32>
    %28 = arith.addf %23, %27 : vector<16x128xf32>
    %29 = arith.truncf %19 : vector<16x128xf32> to vector<16x128xbf16>
    %c2 = arith.constant 2 : index
    %c0_14 = arith.constant 0 : index
    %c0_15 = arith.constant 0 : index
    %30 = vector.load %arg4[%c2, %c0_14, %c0_15] : memref<3x128x128xbf16, #tpu.memory_space<vmem>>, vector<1x128x128xbf16>
    %31 = vector.shape_cast %30 : vector<1x128x128xbf16> to vector<128x128xbf16>
    %cst_16 = arith.constant dense<0.000000e+00> : vector<16x128xf32>
    %32 = tpu.matmul %29, %31, %cst_16 {dimension_numbers = #tpu.dot_dimension_numbers<[1], [0], [0], [1], [0, 0, 1, 1], [], []>} : vector<16x128xbf16>, vector<128x128xbf16>, vector<16x128xf32> -> vector<16x128xf32>
    %33 = arith.addf %28, %32 : vector<16x128xf32>
    %34 = vector.broadcast %7 : f32 to vector<16x128xf32>
    %35 = arith.mulf %34, %8 : vector<16x128xf32>
    %36 = arith.addf %35, %33 : vector<16x128xf32>
    %cst_17 = arith.constant 0.000000e+00 : f32
    %37 = vector.broadcast %cst_17 : f32 to vector<16x128xf32>
    %38 = arith.maximumf %36, %37 : vector<16x128xf32>
    %c1_i32_18 = arith.constant 1 : i32
    %39 = tpu.dynamic_rotate %38 by %c1_i32_18 dim 0 : vector<16x128xf32>, i32 -> vector<16x128xf32>
    %cst_19 = arith.constant 0.000000e+00 : f32
    %40 = vector.shape_cast %4 : vector<16x1xi1> to vector<16x1xi1>
    %41 = vector.broadcast %40 : vector<16x1xi1> to vector<16x128xi1>
    %42 = vector.broadcast %cst_19 : f32 to vector<16x128xf32>
    %43 = arith.select %41, %42, %39 : vector<16x128xi1>, vector<16x128xf32>
    %c15_i32_20 = arith.constant 15 : i32
    %44 = tpu.dynamic_rotate %38 by %c15_i32_20 dim 0 : vector<16x128xf32>, i32 -> vector<16x128xf32>
    %cst_21 = arith.constant 0.000000e+00 : f32
    %45 = vector.shape_cast %6 : vector<16x1xi1> to vector<16x1xi1>
    %46 = vector.broadcast %45 : vector<16x1xi1> to vector<16x128xi1>
    %47 = vector.broadcast %cst_21 : f32 to vector<16x128xf32>
    %48 = arith.select %46, %47, %44 : vector<16x128xi1>, vector<16x128xf32>
    %49 = arith.truncf %43 : vector<16x128xf32> to vector<16x128xbf16>
    %c0_22 = arith.constant 0 : index
    %c0_23 = arith.constant 0 : index
    %c0_24 = arith.constant 0 : index
    %50 = vector.load %arg5[%c0_22, %c0_23, %c0_24] : memref<3x128x128xbf16, #tpu.memory_space<vmem>>, vector<1x128x128xbf16>
    %51 = vector.shape_cast %50 : vector<1x128x128xbf16> to vector<128x128xbf16>
    %cst_25 = arith.constant dense<0.000000e+00> : vector<16x128xf32>
    %52 = tpu.matmul %49, %51, %cst_25 {dimension_numbers = #tpu.dot_dimension_numbers<[1], [0], [0], [1], [0, 0, 1, 1], [], []>} : vector<16x128xbf16>, vector<128x128xbf16>, vector<16x128xf32> -> vector<16x128xf32>
    %53 = arith.truncf %38 : vector<16x128xf32> to vector<16x128xbf16>
    %c1_26 = arith.constant 1 : index
    %c0_27 = arith.constant 0 : index
    %c0_28 = arith.constant 0 : index
    %54 = vector.load %arg5[%c1_26, %c0_27, %c0_28] : memref<3x128x128xbf16, #tpu.memory_space<vmem>>, vector<1x128x128xbf16>
    %55 = vector.shape_cast %54 : vector<1x128x128xbf16> to vector<128x128xbf16>
    %cst_29 = arith.constant dense<0.000000e+00> : vector<16x128xf32>
    %56 = tpu.matmul %53, %55, %cst_29 {dimension_numbers = #tpu.dot_dimension_numbers<[1], [0], [0], [1], [0, 0, 1, 1], [], []>} : vector<16x128xbf16>, vector<128x128xbf16>, vector<16x128xf32> -> vector<16x128xf32>
    %57 = arith.addf %52, %56 : vector<16x128xf32>
    %58 = arith.truncf %48 : vector<16x128xf32> to vector<16x128xbf16>
    %c2_30 = arith.constant 2 : index
    %c0_31 = arith.constant 0 : index
    %c0_32 = arith.constant 0 : index
    %59 = vector.load %arg5[%c2_30, %c0_31, %c0_32] : memref<3x128x128xbf16, #tpu.memory_space<vmem>>, vector<1x128x128xbf16>
    %60 = vector.shape_cast %59 : vector<1x128x128xbf16> to vector<128x128xbf16>
    %cst_33 = arith.constant dense<0.000000e+00> : vector<16x128xf32>
    %61 = tpu.matmul %58, %60, %cst_33 {dimension_numbers = #tpu.dot_dimension_numbers<[1], [0], [0], [1], [0, 0, 1, 1], [], []>} : vector<16x128xbf16>, vector<128x128xbf16>, vector<16x128xf32> -> vector<16x128xf32>
    %62 = arith.addf %57, %61 : vector<16x128xf32>
    %c0_34 = arith.constant 0 : index
    %c0_35 = arith.constant 0 : index
    %63 = vector.load %arg6[%c0_34, %c0_35] : memref<1x128xf32, #tpu.memory_space<vmem>>, vector<1x128xf32>
    %64 = vector.broadcast %63 : vector<1x128xf32> to vector<16x128xf32>
    %65 = arith.addf %62, %64 : vector<16x128xf32>
    %cst_36 = arith.constant 0.000000e+00 : f32
    %66 = vector.broadcast %cst_36 : f32 to vector<16x128xf32>
    %67 = arith.maximumf %65, %66 : vector<16x128xf32>
    %c1_i32_37 = arith.constant 1 : i32
    %68 = tpu.dynamic_rotate %67 by %c1_i32_37 dim 0 : vector<16x128xf32>, i32 -> vector<16x128xf32>
    %cst_38 = arith.constant 0.000000e+00 : f32
    %69 = vector.shape_cast %4 : vector<16x1xi1> to vector<16x1xi1>
    %70 = vector.broadcast %69 : vector<16x1xi1> to vector<16x128xi1>
    %71 = vector.broadcast %cst_38 : f32 to vector<16x128xf32>
    %72 = arith.select %70, %71, %68 : vector<16x128xi1>, vector<16x128xf32>
    %c15_i32_39 = arith.constant 15 : i32
    %73 = tpu.dynamic_rotate %67 by %c15_i32_39 dim 0 : vector<16x128xf32>, i32 -> vector<16x128xf32>
    %cst_40 = arith.constant 0.000000e+00 : f32
    %74 = vector.shape_cast %6 : vector<16x1xi1> to vector<16x1xi1>
    %75 = vector.broadcast %74 : vector<16x1xi1> to vector<16x128xi1>
    %76 = vector.broadcast %cst_40 : f32 to vector<16x128xf32>
    %77 = arith.select %75, %76, %73 : vector<16x128xi1>, vector<16x128xf32>
    %78 = arith.truncf %72 : vector<16x128xf32> to vector<16x128xbf16>
    %c0_41 = arith.constant 0 : index
    %c0_42 = arith.constant 0 : index
    %c0_43 = arith.constant 0 : index
    %79 = vector.load %arg7[%c0_41, %c0_42, %c0_43] : memref<3x128x128xbf16, #tpu.memory_space<vmem>>, vector<1x128x128xbf16>
    %80 = vector.shape_cast %79 : vector<1x128x128xbf16> to vector<128x128xbf16>
    %cst_44 = arith.constant dense<0.000000e+00> : vector<16x128xf32>
    %81 = tpu.matmul %78, %80, %cst_44 {dimension_numbers = #tpu.dot_dimension_numbers<[1], [0], [0], [1], [0, 0, 1, 1], [], []>} : vector<16x128xbf16>, vector<128x128xbf16>, vector<16x128xf32> -> vector<16x128xf32>
    %82 = arith.truncf %67 : vector<16x128xf32> to vector<16x128xbf16>
    %c1_45 = arith.constant 1 : index
    %c0_46 = arith.constant 0 : index
    %c0_47 = arith.constant 0 : index
    %83 = vector.load %arg7[%c1_45, %c0_46, %c0_47] : memref<3x128x128xbf16, #tpu.memory_space<vmem>>, vector<1x128x128xbf16>
    %84 = vector.shape_cast %83 : vector<1x128x128xbf16> to vector<128x128xbf16>
    %cst_48 = arith.constant dense<0.000000e+00> : vector<16x128xf32>
    %85 = tpu.matmul %82, %84, %cst_48 {dimension_numbers = #tpu.dot_dimension_numbers<[1], [0], [0], [1], [0, 0, 1, 1], [], []>} : vector<16x128xbf16>, vector<128x128xbf16>, vector<16x128xf32> -> vector<16x128xf32>
    %86 = arith.addf %81, %85 : vector<16x128xf32>
    %87 = arith.truncf %77 : vector<16x128xf32> to vector<16x128xbf16>
    %c2_49 = arith.constant 2 : index
    %c0_50 = arith.constant 0 : index
    %c0_51 = arith.constant 0 : index
    %88 = vector.load %arg7[%c2_49, %c0_50, %c0_51] : memref<3x128x128xbf16, #tpu.memory_space<vmem>>, vector<1x128x128xbf16>
    %89 = vector.shape_cast %88 : vector<1x128x128xbf16> to vector<128x128xbf16>
    %cst_52 = arith.constant dense<0.000000e+00> : vector<16x128xf32>
    %90 = tpu.matmul %87, %89, %cst_52 {dimension_numbers = #tpu.dot_dimension_numbers<[1], [0], [0], [1], [0, 0, 1, 1], [], []>} : vector<16x128xbf16>, vector<128x128xbf16>, vector<16x128xf32> -> vector<16x128xf32>
    %91 = arith.addf %86, %90 : vector<16x128xf32>
    %c0_53 = arith.constant 0 : index
    %c0_54 = arith.constant 0 : index
    %92 = vector.load %arg8[%c0_53, %c0_54] : memref<1x128xf32, #tpu.memory_space<vmem>>, vector<1x128xf32>
    %93 = vector.broadcast %92 : vector<1x128xf32> to vector<16x128xf32>
    %94 = arith.addf %91, %93 : vector<16x128xf32>
    %95 = arith.addf %94, %38 : vector<16x128xf32>
    %cst_55 = arith.constant 0.000000e+00 : f32
    %96 = vector.broadcast %cst_55 : f32 to vector<16x128xf32>
    %97 = arith.maximumf %95, %96 : vector<16x128xf32>
    %c0_56 = arith.constant 0 : index
    %c0_57 = arith.constant 0 : index
    %98 = vector.load %arg9[%c0_56, %c0_57] : memref<16x128xf32, #tpu.memory_space<vmem>>, vector<16x128xf32>
    tpu.vector_store %arg9[%c0_56, %c0_57], %97 {strides = array<i32>} : memref<16x128xf32, #tpu.memory_space<vmem>>, vector<16x128xf32>,
    return
  }
  func.func @transform_0(%arg0: i32) -> i32 {
    %c0_i32 = arith.constant 0 : i32
    %c0_i32_0 = arith.constant 0 : i32
    return %c0_i32 : i32
  }
  func.func @transform_1(%arg0: i32) -> (i32, i32) {
    %c0_i32 = arith.constant 0 : i32
    %c0_i32_0 = arith.constant 0 : i32
    return %arg0, %c0_i32 : i32, i32
  }
  func.func @transform_2(%arg0: i32) -> (i32, i32) {
    %c0_i32 = arith.constant 0 : i32
    %c0_i32_0 = arith.constant 0 : i32
    return %arg0, %c0_i32 : i32, i32
  }
  func.func @transform_3(%arg0: i32) -> (i32, i32, i32) {
    %c0_i32 = arith.constant 0 : i32
    %c0_i32_0 = arith.constant 0 : i32
    %c0_i32_1 = arith.constant 0 : i32
    %c0_i32_2 = arith.constant 0 : i32
    return %c0_i32, %c0_i32_0, %c0_i32_1 : i32, i32, i32
  }
  func.func @transform_4(%arg0: i32) -> (i32, i32, i32) {
    %c0_i32 = arith.constant 0 : i32
    %c0_i32_0 = arith.constant 0 : i32
    %c0_i32_1 = arith.constant 0 : i32
    %c0_i32_2 = arith.constant 0 : i32
    return %c0_i32, %c0_i32_0, %c0_i32_1 : i32, i32, i32
  }
  func.func @transform_5(%arg0: i32) -> (i32, i32) {
    %c0_i32 = arith.constant 0 : i32
    %c0_i32_0 = arith.constant 0 : i32
    %c0_i32_1 = arith.constant 0 : i32
    return %c0_i32, %c0_i32_0 : i32, i32
  }
  func.func @transform_6(%arg0: i32) -> (i32, i32, i32) {
    %c0_i32 = arith.constant 0 : i32
    %c0_i32_0 = arith.constant 0 : i32
    %c0_i32_1 = arith.constant 0 : i32
    %c0_i32_2 = arith.constant 0 : i32
    return %c0_i32, %c0_i32_0, %c0_i32_1 : i32, i32, i32
  }
  func.func @transform_7(%arg0: i32) -> (i32, i32) {
    %c0_i32 = arith.constant 0 : i32
    %c0_i32_0 = arith.constant 0 : i32
    %c0_i32_1 = arith.constant 0 : i32
    return %c0_i32, %c0_i32_0 : i32, i32
  }
  func.func @transform_8(%arg0: i32) -> (i32, i32) {
    %c0_i32 = arith.constant 0 : i32
    %c0_i32_0 = arith.constant 0 : i32
    return %arg0, %c0_i32 : i32, i32
  }
}

</mosaic_0001>

<bundles_post_ra>
// kernel: tile.13
= control target key start
LH: loop header
LB: loop body
LE: loop exit
PB: predicated region body
PF: predicated region fallthrough
CT: control target
= control target key end

     0   :  { %s28_s0 = inlined_call_operand.vmem [shape: f32[8], index: 0, kind: input, shape index: {}]   ;;  %s29_s1 = inlined_call_operand.vmem [shape: f32[16,8], index: 1, kind: output, shape index: {}]  }
   0x1   :  { %v4_v0 = vld [vmem:[%s28_s0] ss:$0 sm:$0xff] }
   0x2   :  { %5 = vst [vmem:[%s29_s1] sm:$0xff] %v4_v0 }
   0x3   :  { %8 = vst [vmem:[%s29_s1 + $0x8] sm:$0xff] %v4_v0 }

// kernel: tile.14
= control target key start
LH: loop header
LB: loop body
LE: loop exit
PB: predicated region body
PF: predicated region fallthrough
CT: control target
= control target key end

     0   :  { %s131_s10 = smov 120   ;;  %s132_s11 = smov 104   ;;  %vm3_vm0 = vcmask 64512   ;;  %vm9_vm1 = vcmask 1048512   ;;  %vm15_vm2 = vcmask 982912   ;;  %vm21_vm3 = vcmask 917312   ;;  %s207_s0 = inlined_call_operand.vmem [shape: f32[16,8], index: 0, kind: input, shape index: {}]   ;;  %s208_s1 = inlined_call_operand.vmem [shape: f32[1,128], index: 1, kind: output, shape index: {}]  }
   0x1   :  { %v101_v0 = vld [vmem:[%s207_s0 + $0xf] sm:$0x1]   ;;  %v103_v1 = vld [vmem:[%s207_s0 + $0xd] sm:$0x1]   ;;  %v105_v2 = vld [vmem:[%s207_s0 + $0xb] sm:$0x1]  }
   0x2   :  { %7 = vrot.lane.b32.xlu0 %v101_v0, %s131_s10  ;;  %19 = vrot.lane.b32.xlu1 %v103_v1, %s132_s11  ;;  %s133_s14 = smov 88   ;;  %v102_v3 = vld [vmem:[%s207_s0 + $0xe] sm:$0x1]   ;;  %v104_v4 = vld [vmem:[%s207_s0 + $0xc] sm:$0x1]   ;;  %s134_s19 = smov 112  }
   0x3   :  { %31 = vrot.lane.b32.xlu2 %v105_v2, %s133_s14  ;;  %s135_s20 = smov 96   ;;  %v106_v5 = vld [vmem:[%s207_s0 + $0xa] sm:$0x1]   ;;  %s136_s23 = smov 80   ;;  %v107_v6 = vld [vmem:[%s207_s0 + $0x9] sm:$0x1]  }
   0x4   :  { %v108_v7 = vld [vmem:[%s207_s0 + $0x8] sm:$0x1]   ;;  %s137_s28 = smov 72   ;;  %s138_s29 = smov 64   ;;  %v109_v8 = vld [vmem:[%s207_s0 + $0x7] sm:$0x1]  }
   0x5   :  { %s139_s3 = smov 56   ;;  %v110_v9 = vld [vmem:[%s207_s0 + $0x6] sm:$0x1]   ;;  %v111_v10 = vld [vmem:[%s207_s0 + $0x5] sm:$0x1]   ;;  %s140_s8 = smov 48  }
   0x6   :  { %s141_s9 = smov 40   ;;  %v112_v11 = vld [vmem:[%s207_s0 + $0x4] sm:$0x1]   ;;  %s142_s12 = smov 32   ;;  %v113_v12 = vld [vmem:[%s207_s0 + $0x3] sm:$0x1]  }
   0x7   :  { %v114_v13 = vld [vmem:[%s207_s0 + $0x2] sm:$0x1]   ;;  %s143_s17 = smov 24   ;;  %s144_s18 = smov 16   ;;  %v115_v14 = vld [vmem:[%s207_s0 + $0x1] sm:$0x1]  }
   0x8   :  { %s145_s21 = smov 8   ;;  %v2_v15 = vld [vmem:[%s207_s0] sm:$0x1]   ;;  %vm27_vm4 = vcmask 851712   ;;  %vm33_vm5 = vcmask 786112   ;;  %vm39_vm6 = vcmask 720512  }
   0x9   :  { %4 = vst.msk [vmem:[#allocation0] sm:$0x1] %vm3_vm0, %v2_v15   ;;  %vm45_vm7 = vcmask 654912   ;;  %vm51_vm8 = vcmask 589312   ;;  %vm57_vm9 = vcmask 523712   ;;  %vm63_vm10 = vcmask 458112  }
   0xa   :  { %13 = vrot.lane.b32.xlu0 %v102_v3, %s134_s19  ;;  %25 = vrot.lane.b32.xlu1 %v104_v4, %s135_s20  ;;  %vm69_vm11 = vcmask 392512   ;;  %vm75_vm12 = vcmask 326912   ;;  %vm81_vm13 = vcmask 261312   ;;  %vm87_vm14 = vcmask 195712  }
   0xb   :  { %37 = vrot.lane.b32.xlu2 %v106_v5, %s136_s23  ;;  %vm93_vm15 = vcmask 130112  }
  0x12   :  { %43 = vrot.lane.b32.xlu0 %v107_v6, %s137_s28  ;;  %49 = vrot.lane.b32.xlu1 %v108_v7, %s138_s29 }
  0x13   :  { %55 = vrot.lane.b32.xlu2 %v109_v8, %s139_s3 }
  0x1a   :  { %61 = vrot.lane.b32.xlu0 %v110_v9, %s140_s8  ;;  %67 = vrot.lane.b32.xlu1 %v111_v10, %s141_s9 }
  0x1b   :  { %73 = vrot.lane.b32.xlu2 %v112_v11, %s142_s12 }
  0x22   :  { %79 = vrot.lane.b32.xlu0 %v113_v12, %s143_s17  ;;  %85 = vrot.lane.b32.xlu1 %v114_v13, %s144_s18 }
  0x23   :  { %91 = vrot.lane.b32.xlu2 %v115_v14, %s145_s21 }
  0x5d   :  { %v32_v16 = vpop.permute.xlu2 %31  }
  0x65   :  { %v38_v17 = vpop.permute.xlu2 %37  }
  0x6d   :  { %v56_v18 = vpop.permute.xlu2 %55  }
  0x74   :  { %v8_v19 = vpop.permute.xlu0 %7   ;;  %v20_v20 = vpop.permute.xlu1 %19  }
  0x75   :  { %10 = vst.msk [vmem:[#allocation0] sm:$0x1] %vm9_vm1, %v8_v19   ;;  %v74_v21 = vpop.permute.xlu2 %73  }
  0x7c   :  { %v14_v22 = vpop.permute.xlu0 %13   ;;  %v26_v23 = vpop.permute.xlu1 %25  }
  0x7d   :  { %16 = vst.msk [vmem:[#allocation0] sm:$0x1] %vm15_vm2, %v14_v22   ;;  %v92_v24 = vpop.permute.xlu2 %91  }
  0x7e   :  { %22 = vst.msk [vmem:[#allocation0] sm:$0x1] %vm21_vm3, %v20_v20  }
  0x7f   :  { %28 = vst.msk [vmem:[#allocation0] sm:$0x1] %vm27_vm4, %v26_v23  }
  0x80   :  { %34 = vst.msk [vmem:[#allocation0] sm:$0x1] %vm33_vm5, %v32_v16  }
  0x81   :  { %40 = vst.msk [vmem:[#allocation0] sm:$0x1] %vm39_vm6, %v38_v17  }
  0x84   :  { %v44_v25 = vpop.permute.xlu0 %43   ;;  %v50_v26 = vpop.permute.xlu1 %49  }
  0x85   :  { %46 = vst.msk [vmem:[#allocation0] sm:$0x1] %vm45_vm7, %v44_v25  }
  0x86   :  { %52 = vst.msk [vmem:[#allocation0] sm:$0x1] %vm51_vm8, %v50_v26  }
  0x87   :  { %58 = vst.msk [vmem:[#allocation0] sm:$0x1] %vm57_vm9, %v56_v18  }
  0x8c   :  { %v62_v27 = vpop.permute.xlu0 %61   ;;  %v68_v28 = vpop.permute.xlu1 %67  }
  0x8d   :  { %64 = vst.msk [vmem:[#allocation0] sm:$0x1] %vm63_vm10, %v62_v27  }
  0x8e   :  { %70 = vst.msk [vmem:[#allocation0] sm:$0x1] %vm69_vm11, %v68_v28  }
  0x8f   :  { %76 = vst.msk [vmem:[#allocation0] sm:$0x1] %vm75_vm12, %v74_v21  }
  0x94   :  { %v80_v29 = vpop.permute.xlu0 %79   ;;  %v86_v30 = vpop.permute.xlu1 %85  }
  0x95   :  { %82 = vst.msk [vmem:[#allocation0] sm:$0x1] %vm81_vm13, %v80_v29  }
  0x96   :  { %88 = vst.msk [vmem:[#allocation0] sm:$0x1] %vm87_vm14, %v86_v30  }
  0x97   :  { %94 = vst.msk [vmem:[#allocation0] sm:$0x1] %vm93_vm15, %v92_v24  }
  0x9e   :  { %v97_v31 = vld [vmem:[#allocation0] sm:$0x1] }
  0x9f   :  { %100 = vst [vmem:[%s208_s1] sm:$0x1] %v97_v31 }

// kernel: channel_fuse_block.1
= control target key start
LH: loop header
LB: loop body
LE: loop exit
PB: predicated region body
PF: predicated region fallthrough
CT: control target
= control target key end

     0   :  { %13 = vsyncpa [#allocation3], 0  ;;  %s1828_s27 = smov 0   ;;  %s2140_s0 = inlined_call_operand.vmem [shape: f32[2], index: 0, kind: input, shape index: {}]   ;;  %s2141_s1 = inlined_call_operand.vmem [shape: f32[32,128], index: 1, kind: input, shape index: {}]   ;;  %s2142_s2 = inlined_call_operand.vmem [shape: f32[32,128], index: 2, kind: input, shape index: {}]   ;;  %s2143_s3 = inlined_call_operand.vmem [shape: bf16[3,128,128], index: 3, kind: input, shape index: {}]   ;;  %s2144_s4 = inlined_call_operand.vmem [shape: bf16[3,128,128], index: 4, kind: input, shape index: {}]   ;;  %s2145_s5 = inlined_call_operand.vmem [shape: f32[1,128], index: 5, kind: input, shape index: {}]   ;;  %s2146_s6 = inlined_call_operand.vmem [shape: bf16[3,128,128], index: 6, kind: input, shape index: {}]   ;;  %s2147_s7 = inlined_call_operand.vmem [shape: f32[1,128], index: 7, kind: input, shape index: {}]   ;;  %s2148_s8 = inlined_call_operand.vmem [shape: f32[32,128], index: 8, kind: output, shape index: {}]  }
   0x1 LB: > { %s1235_s28 = sadd.s32 4294967295, %s1779_s27   ;;  %p1237_p0 = scmp.ge.s32.totalorder %s1779_s27, 1  ;;  %s1779_s27 = sphi %s1828_s27, %s19_s27  }
   0x2   : > { %p228_p1 = scmp.lt.s32.totalorder %s1779_s27, 3  ;;  %s240_s9 = sshll.u32 %s2140_s0, 4  ;;  %s241_s9 = int_to_ptr.vmem [resolvable:$true] %s240_s9 }
   0x3   : > { %p1740_p3 = scmp.eq.s32.totalorder %s1235_s28, 0  ;;  %s1781_s10 = smov [#allocation2]  }
   0x4   : > { %p229_p2 = pnand %p1237_p0, %p228_p1 }
   0x6   : > { %p1736_p4 = pneg %p229_p2  ;;  %286 = sbr.rel (%p229_p2) target bundleno = 500 (0x1f4), region = 52 }
   0x8   : > { %p1737_p5 = pnand %p1740_p3, %p1736_p4 }
   0xa   : > { %1739 = dma.vmem_to_smem (!%p1737_p5), %s241_s9, 16, %s1781_s10, [#allocation3]  }
   0xb   : > { %1774 = dma.done.wait (%p1740_p3), [#allocation3], 16  }
   0xc   : > { %1776 = vsyncadd (%p1740_p3), [#allocation3], 4294967280 }
   0xd   : > { %293 = sfence }
   0xe   : > { %v1673_v0 = vld [vmem:[%s2143_s3 + $0x78] sm:$0xff]  ;;  %v1672_v3 = vld [vmem:[%s2143_s3 + $0x70] sm:$0xff]  ;;  %s1242_s21 = sshll.u32 %s1235_s28, 1  ;;  %v1671_v6 = vld [vmem:[%s2143_s3 + $0x68] sm:$0xff]  ;;  %v345_v13 = vlaneseq  ;;  %vm1782_vm4 = vmmov 1   ;;  %s354_s22 = sld [smem:[#allocation2]] }
   0xf   : > { %v1665_v1 = vld [vmem:[%s2143_s3 + $0x38] sm:$0xff]  ;;  %464 = vmatpush.bf16.msra.mxu0 %v1673_v0  ;;  %v1664_v4 = vld [vmem:[%s2143_s3 + $0x30] sm:$0xff]  ;;  %p328_p6 = scmp.lt.s32.totalorder %s1242_s21, 3  ;;  %v1663_v7 = vld [vmem:[%s2143_s3 + $0x28] sm:$0xff] }
  0x10   : > { %v1681_v2 = vld [vmem:[%s2143_s3 + $0xb8] sm:$0xff]  ;;  %526 = vmatpush.bf16.msra.mxu1 %v1665_v1  ;;  %v1680_v5 = vld [vmem:[%s2143_s3 + $0xb0] sm:$0xff]  ;;  %v1679_v8 = vld [vmem:[%s2143_s3 + $0xa8] sm:$0xff]  ;;  %v1896_v18 = vshrl.u32 %v345_v13, 7 }
  0x11   : > { %606 = vmatpush.bf16.msra.mxu2 %v1681_v2  ;;  %s2154_s21 = smov (!%p328_p6, %s1242_s21), 3  ;;  %v1697_v9 = vld [vmem:[%s2144_s4 + $0x78] sm:$0xff]  ;;  %v1670_v10 = vld [vmem:[%s2143_s3 + $0x60] sm:$0xff]  ;;  %v1696_v14 = vld [vmem:[%s2144_s4 + $0x70] sm:$0xff] }
  0x12   : > { %v1662_v11 = vld [vmem:[%s2143_s3 + $0x20] sm:$0xff]  ;;  %724 = vmatpush.bf16.msra.mxu3 %v1697_v9  ;;  %s1881_s19 = sshll.u32 %s2154_s21, 3  ;;  %v1669_v15 = vld [vmem:[%s2143_s3 + $0x58] sm:$0xff]  ;;  %v1668_v19 = vld [vmem:[%s2143_s3 + $0x50] sm:$0xff]  ;;  %v347_v24 = vadd.s32 8, %v1896_v18  ;;  %v348_v32 = vand.u32 15, %v1896_v18 }
  0x13   : > { %465 = vmatpush.bf16.msra.mxu0 %v1672_v3  ;;  %v1678_v12 = vld [vmem:[%s2143_s3 + $0xa0] sm:$0xff]  ;;  %v1661_v16 = vld [vmem:[%s2143_s3 + $0x18] sm:$0xff]  ;;  %s337_s21 = scalar_lea.vmem %s2142_s2, %s1881_s19  ;;  %v1660_v20 = vld [vmem:[%s2143_s3 + $0x10] sm:$0xff]  ;;  %vm361_vm0 = vcmp.lt.s32.totalorder %v1896_v18, 1  ;;  %vm372_vm1 = vcmp.lt.s32.totalorder %v1896_v18, 7  ;;  %s343_s9 = scalar_lea.vmem %s2148_s8, %s1881_s19 }
  0x14   : > { %527 = vmatpush.bf16.msra.mxu1 %v1664_v4  ;;  %v1677_v17 = vld [vmem:[%s2143_s3 + $0x98] sm:$0xff]  ;;  %v1676_v21 = vld [vmem:[%s2143_s3 + $0x90] sm:$0xff]  ;;  %v357_v22 = vld [vmem:[%s337_s21] sm:$0xff]  ;;  %v349_v33 = vand.u32 15, %v347_v24  ;;  %vm1730_vm2 = vcmp.ne.s32.totalorder %v348_v32, 0 }
  0x15   : > { %607 = vmatpush.bf16.msra.mxu2 %v1680_v5  ;;  %v358_v23 = vld [vmem:[%s337_s21 + $0x8] sm:$0xff]  ;;  %v359_v27 = vrot.slane %v357_v22, 7  ;;  %v370_v30 = vrot.slane %v357_v22, 1  ;;  %v1666_v34 = vld [vmem:[%s2143_s3 + $0x40] sm:$0xff]  ;;  %v1689_v41 = vld [vmem:[%s2144_s4 + $0x38] sm:$0xff]  ;;  %s331_s21 = scalar_lea.vmem %s2141_s1, %s1881_s19 }
  0x16   : > { %725 = vmatpush.bf16.msra.mxu3 %v1696_v14  ;;  %v1667_v25 = vld [vmem:[%s2143_s3 + $0x48] sm:$0xff]  ;;  %v360_v28 = vrot.slane %v358_v23, 7  ;;  %v371_v31 = vrot.slane %v358_v23, 1  ;;  %v1658_v35 = vld [vmem:[%s2143_s3] sm:$0xff]  ;;  %vm1731_vm3 = vcmp.ne.s32.totalorder %v349_v33, 15  ;;  %v1705_v42 = vld [vmem:[%s2144_s4 + $0xb8] sm:$0xff]  ;;  %v398_v43 = vpack.c.bf16 %v358_v23, %v357_v22 }
  0x17   : > { %466 = vmatpush.bf16.msra.mxu0 %v1671_v6  ;;  %v1659_v26 = vld [vmem:[%s2143_s3 + $0x8] sm:$0xff]  ;;  %v1674_v38 = vld [vmem:[%s2143_s3 + $0x80] sm:$0xff]  ;;  %vm1943_vm5 = vmpackc.low %vm1782_vm4, %vm1730_vm2 }
  0x18   : > { %528 = vmatpush.bf16.msra.mxu1 %v1663_v7  ;;  %v1675_v29 = vld [vmem:[%s2143_s3 + $0x88] sm:$0xff]  ;;  %v362_v36 = vsel %vm361_vm0, %v359_v27, %v360_v28  ;;  %v363_v37 = vsel %vm361_vm0, %v360_v28, %v359_v27  ;;  %v373_v39 = vsel %vm372_vm1, %v370_v30, %v371_v31  ;;  %v374_v40 = vsel %vm372_vm1, %v371_v31, %v370_v30  ;;  %vm1947_vm6 = vmpackc.low %vm1731_vm3, %vm1782_vm4  ;;  %v1688_v48 = vld [vmem:[%s2144_s4 + $0x30] sm:$0xff] }
  0x19   : > { %608 = vmatpush.bf16.msra.mxu2 %v1679_v8  ;;  %v1330_v44 = vpack.c.bf16 %v362_v36, %v363_v37  ;;  %v1382_v46 = vpack.c.bf16 %v374_v40, %v373_v39  ;;  %v1704_v49 = vld [vmem:[%s2144_s4 + $0xb0] sm:$0xff]  ;;  %v1695_v50 = vld [vmem:[%s2144_s4 + $0x68] sm:$0xff]  ;;  %v1694_v53 = vld [vmem:[%s2144_s4 + $0x60] sm:$0xff] }
  0x1a   : > { %726 = vmatpush.bf16.msra.mxu3 %v1695_v50  ;;  %v1687_v51 = vld [vmem:[%s2144_s4 + $0x28] sm:$0xff]  ;;  %v1686_v54 = vld [vmem:[%s2144_s4 + $0x20] sm:$0xff]  ;;  %v1693_v56 = vld [vmem:[%s2144_s4 + $0x58] sm:$0xff] }
  0x1b   : > { %467 = vmatpush.bf16.msra.mxu0 %v1670_v10  ;;  %v1703_v52 = vld [vmem:[%s2144_s4 + $0xa8] sm:$0xff]  ;;  %v1702_v55 = vld [vmem:[%s2144_s4 + $0xa0] sm:$0xff]  ;;  %v1685_v57 = vld [vmem:[%s2144_s4 + $0x18] sm:$0xff] }
  0x1c   : > { %529 = vmatpush.bf16.msra.mxu1 %v1662_v11  ;;  %v1701_v58 = vld [vmem:[%s2144_s4 + $0x98] sm:$0xff]  ;;  %v1692_v59 = vld [vmem:[%s2144_s4 + $0x50] sm:$0xff]  ;;  %v1691_v62 = vld [vmem:[%s2144_s4 + $0x48] sm:$0xff] }
  0x1d   : > { %609 = vmatpush.bf16.msra.mxu2 %v1678_v12  ;;  %v1684_v60 = vld [vmem:[%s2144_s4 + $0x10] sm:$0xff]  ;;  %v1683_v63 = vld [vmem:[%s2144_s4 + $0x8] sm:$0xff]  ;;  %v1690_v1 = vld [vmem:[%s2144_s4 + $0x40] sm:$0xff] }
  0x1e   : > { %727 = vmatpush.bf16.msra.mxu3 %v1694_v53  ;;  %v1700_v61 = vld [vmem:[%s2144_s4 + $0x90] sm:$0xff]  ;;  %v1699_v0 = vld [vmem:[%s2144_s4 + $0x88] sm:$0xff]  ;;  %v1682_v2 = vld [vmem:[%s2144_s4] sm:$0xff] }
  0x1f   : > { %468 = vmatpush.bf16.msra.mxu0 %v1669_v15  ;;  %v1698_v3 = vld [vmem:[%s2144_s4 + $0x80] sm:$0xff]  ;;  %v1721_v4 = vld [vmem:[%s2146_s6 + $0x78] sm:$0xff]  ;;  %v1720_v7 = vld [vmem:[%s2146_s6 + $0x70] sm:$0xff]  ;;  %v622_v15 = vstv %s354_s22 }
  0x20   : > { %530 = vmatpush.bf16.msra.mxu1 %v1661_v16  ;;  %v1713_v5 = vld [vmem:[%s2146_s6 + $0x38] sm:$0xff]  ;;  %v1712_v8 = vld [vmem:[%s2146_s6 + $0x30] sm:$0xff]  ;;  %v1719_v12 = vld [vmem:[%s2146_s6 + $0x68] sm:$0xff] }
  0x21   : > { %610 = vmatpush.bf16.msra.mxu2 %v1677_v17  ;;  %v1729_v6 = vld [vmem:[%s2146_s6 + $0xb8] sm:$0xff]  ;;  %v1728_v9 = vld [vmem:[%s2146_s6 + $0xb0] sm:$0xff]  ;;  %v355_v14 = vld [vmem:[%s331_s21] sm:$0xff] }
  0x22   : > { %728 = vmatpush.bf16.msra.mxu3 %v1693_v56  ;;  %v356_v22 = vld [vmem:[%s331_s21 + $0x8] sm:$0xff]  ;;  %v1709_v50 = vld [vmem:[%s2146_s6 + $0x18] sm:$0xff]  ;;  %v1708_v53 = vld [vmem:[%s2146_s6 + $0x10] sm:$0xff] }
  0x23   : > { %469 = vmatpush.bf16.msra.mxu0 %v1668_v19  ;;  %v623_v19 = vmul.f32 %v622_v15, %v355_v14  ;;  %v1707_v56 = vld [vmem:[%s2146_s6 + $0x8] sm:$0xff] }
  0x24   : > { %531 = vmatpush.bf16.msra.mxu1 %v1660_v20 }
  0x25   : > { %611 = vmatpush.bf16.msra.mxu2 %v1676_v21 }
  0x26   : > { %729 = vmatpush.bf16.msra.mxu3 %v1692_v59  ;;  %v1706_v59 = vld [vmem:[%s2146_s6] sm:$0xff] }
  0x27   : > { %470 = vmatpush.bf16.msra.mxu0 %v1667_v25  ;;  %v624_v25 = vmul.f32 %v622_v15, %v356_v22 }
  0x28   : > { %532 = vmatpush.bf16.msra.mxu1 %v1659_v26 }
  0x29   : > { %612 = vmatpush.bf16.msra.mxu2 %v1675_v29 }
  0x2a   : > { %730 = vmatpush.bf16.msra.mxu3 %v1691_v62 }
  0x2b   : > { %471 = vmatpush.bf16.msra.mxu0 %v1666_v34 }
  0x2c   : > { %533 = vmatpush.bf16.msra.mxu1 %v1658_v35 }
  0x2d   : > { %613 = vmatpush.bf16.msra.mxu2 %v1674_v38 }
  0x2e   : > { %472 = vmatmul.bf16.vlgmr.msra.gmra.mxu0 %v398_v43  ;;  %731 = vmatpush.bf16.msra.mxu3 %v1690_v1  ;;  %v1727_v43 = vld [vmem:[%s2146_s6 + $0xa8] sm:$0xff] }
  0x2f   : > { %786 = vmatpush.bf16.msrb.mxu0 %v1689_v41  ;;  %1331 = vmatmul.msk.bf16.vlgmr.msra.gmra.mxu1 %vm1943_vm5, %v1330_v44  ;;  %v1718_v44 = vld [vmem:[%s2146_s6 + $0x60] sm:$0xff] }
  0x30   : > { %866 = vmatpush.bf16.msrb.mxu1 %v1705_v42  ;;  %1383 = vmatmul.msk.bf16.vlgmr.msra.gmra.mxu2 %vm1947_vm6, %v1382_v46  ;;  %v1711_v42 = vld [vmem:[%s2146_s6 + $0x28] sm:$0xff]  ;;  %v1710_v46 = vld [vmem:[%s2146_s6 + $0x20] sm:$0xff] }
  0x31   : > { %985 = vmatpush.bf16.msrb.mxu2 %v1721_v4 }
  0x32   : > { %1047 = vmatpush.bf16.msrb.mxu3 %v1713_v5 }
  0x33   : > { %787 = vmatpush.bf16.msrb.mxu0 %v1688_v48  ;;  %v1726_v48 = vld [vmem:[%s2146_s6 + $0xa0] sm:$0xff] }
  0x34   : > { %867 = vmatpush.bf16.msrb.mxu1 %v1704_v49  ;;  %v1717_v49 = vld [vmem:[%s2146_s6 + $0x58] sm:$0xff] }
  0x35   : > { %986 = vmatpush.bf16.msrb.mxu2 %v1720_v7 }
  0x36   : > { %1048 = vmatpush.bf16.msrb.mxu3 %v1712_v8 }
  0x37   : > { %788 = vmatpush.bf16.msrb.mxu0 %v1687_v51  ;;  %v1725_v51 = vld [vmem:[%s2146_s6 + $0x98] sm:$0xff] }
  0x38   : > { %868 = vmatpush.bf16.msrb.mxu1 %v1703_v52  ;;  %v1716_v52 = vld [vmem:[%s2146_s6 + $0x50] sm:$0xff] }
  0x39   : > { %987 = vmatpush.bf16.msrb.mxu2 %v1719_v12 }
  0x3a   : > { %1049 = vmatpush.bf16.msrb.mxu3 %v1711_v42 }
  0x3b   : > { %789 = vmatpush.bf16.msrb.mxu0 %v1686_v54  ;;  %v1724_v54 = vld [vmem:[%s2146_s6 + $0x90] sm:$0xff] }
  0x3c   : > { %869 = vmatpush.bf16.msrb.mxu1 %v1702_v55  ;;  %v1715_v55 = vld [vmem:[%s2146_s6 + $0x48] sm:$0xff] }
  0x3d   : > { %988 = vmatpush.bf16.msrb.mxu2 %v1718_v44 }
  0x3e   : > { %1050 = vmatpush.bf16.msrb.mxu3 %v1710_v46 }
  0x3f   : > { %790 = vmatpush.bf16.msrb.mxu0 %v1685_v57  ;;  %v1723_v57 = vld [vmem:[%s2146_s6 + $0x88] sm:$0xff] }
  0x40   : > { %870 = vmatpush.bf16.msrb.mxu1 %v1701_v58  ;;  %v1714_v58 = vld [vmem:[%s2146_s6 + $0x40] sm:$0xff] }
  0x41   : > { %989 = vmatpush.bf16.msrb.mxu2 %v1717_v49 }
  0x42   : > { %1051 = vmatpush.bf16.msrb.mxu3 %v1709_v50 }
  0x43   : > { %791 = vmatpush.bf16.msrb.mxu0 %v1684_v60  ;;  %v1722_v60 = vld [vmem:[%s2146_s6 + $0x80] sm:$0xff] }
  0x44   : > { %871 = vmatpush.bf16.msrb.mxu1 %v1700_v61 }
  0x45   : > { %990 = vmatpush.bf16.msrb.mxu2 %v1716_v52 }
  0x46   : > { %1052 = vmatpush.bf16.msrb.mxu3 %v1708_v53 }
  0x47   : > { %792 = vmatpush.bf16.msrb.mxu0 %v1683_v63 }
  0x48   : > { %872 = vmatpush.bf16.msrb.mxu1 %v1699_v0 }
  0x49   : > { %991 = vmatpush.bf16.msrb.mxu2 %v1715_v55 }
  0x4a   : > { %1053 = vmatpush.bf16.msrb.mxu3 %v1707_v56 }
  0x4b   : > { %793 = vmatpush.bf16.msrb.mxu0 %v1682_v2  ;;  %v1752_v2 = vld [vmem:[%s2145_s5] ss:$0 sm:$0xff] }
  0x4c   : > { %873 = vmatpush.bf16.msrb.mxu1 %v1698_v3 }
  0x4d   : > { %992 = vmatpush.bf16.msrb.mxu2 %v1714_v58 }
  0x4e   : > { %1054 = vmatpush.bf16.msrb.mxu3 %v1706_v59 }
  0x4f   : > { %1127 = vmatpush.bf16.msra.mxu0 %v1729_v6 }
  0x53   : > { %1128 = vmatpush.bf16.msra.mxu0 %v1728_v9 }
  0x57   : > { %1129 = vmatpush.bf16.msra.mxu0 %v1727_v43 }
  0x5b   : > { %1130 = vmatpush.bf16.msra.mxu0 %v1726_v48 }
  0x5f   : > { %1131 = vmatpush.bf16.msra.mxu0 %v1725_v51 }
  0x63   : > { %1132 = vmatpush.bf16.msra.mxu0 %v1724_v54 }
  0x67   : > { %1133 = vmatpush.bf16.msra.mxu0 %v1723_v57 }
  0x6b   : > { %1134 = vmatpush.bf16.msra.mxu0 %v1722_v60 }
  0xab   : > { %v473_v10 = vpop.f32.mrf.mxu0 }
  0xac   : > { %v535_v11 = vpop.f32.mrf.mxu1 }
  0xad   : > { %v536_v13 = vadd.f32 %v535_v11, %v473_v10 }
  0xb3   : > { %v615_v16 = vpop.f32.mrf.mxu2  ;;  %v475_v20 = vpop.f32.mrf.mxu0 }
  0xb4   : > { %v620_v17 = vadd.f32 %v615_v16, %v536_v13  ;;  %v537_v21 = vpop.f32.mrf.mxu1 }
  0xb5   : > { %v538_v24 = vadd.f32 %v537_v21, %v475_v20 }
  0xb6   : > { %v625_v23 = vadd.f32 %v623_v19, %v620_v17 }
  0xb8   : > { %v2040_v28 = vmax.f32 %v625_v23, 0.0 }
  0xba   : > { %v629_v31 = vrot.slane %v2040_v28, 7  ;;  %v635_v32 = vrot.slane %v2040_v28, 1 }
  0xbb   : > { %v617_v26 = vpop.f32.mrf.mxu2 }
  0xbc   : > { %v621_v27 = vadd.f32 %v617_v26, %v538_v24 }
  0xbe   : > { %v626_v29 = vadd.f32 %v624_v25, %v621_v27 }
  0xc0   : > { %v2042_v30 = vmax.f32 %v626_v29, 0.0  ;;  %v1753_v29 = vld [vmem:[%s2147_s7] ss:$0 sm:$0xff] }
  0xc2   : > { %v630_v33 = vrot.slane %v2042_v30, 7  ;;  %v636_v34 = vrot.slane %v2042_v30, 1  ;;  %v658_v35 = vpack.c.bf16 %v2042_v30, %v2040_v28 }
  0xc4   : > { %732 = vmatmul.bf16.vlgmr.msra.gmra.mxu3 %v658_v35  ;;  %v631_v36 = vsel %vm361_vm0, %v629_v31, %v630_v33  ;;  %v632_v37 = vsel %vm361_vm0, %v630_v33, %v629_v31  ;;  %v637_v38 = vsel %vm372_vm1, %v635_v32, %v636_v34  ;;  %v638_v39 = vsel %vm372_vm1, %v636_v34, %v635_v32 }
  0xc5   : > { %v1466_v40 = vpack.c.bf16 %v631_v36, %v632_v37  ;;  %v1518_v41 = vpack.c.bf16 %v638_v39, %v637_v38 }
  0xc7   : > { %1467 = vmatmul.msk.bf16.vlgmr.msrb.gmra.mxu0 %vm1943_vm5, %v1466_v40  ;;  %1519 = vmatmul.msk.bf16.vlgmr.msrb.gmra.mxu1 %vm1947_vm6, %v1518_v41 }
 0x144   : > { %v795_v61 = vpop.f32.mrf.mxu0  ;;  %v875_v62 = vpop.f32.mrf.mxu1 }
 0x147   : > { %v733_v63 = vpop.f32.mrf.mxu3 }
 0x148   : > { %v796_v0 = vadd.f32 %v795_v61, %v733_v63 }
 0x14a   : > { %v880_v1 = vadd.f32 %v875_v62, %v796_v0 }
 0x14c   : > { %v886_v3 = vadd.f32 %v1752_v2, %v880_v1  ;;  %v797_v4 = vpop.f32.mrf.mxu0  ;;  %v877_v7 = vpop.f32.mrf.mxu1 }
 0x14e   : > { %v888_v9 = vmax.f32 %v886_v3, 0.0 }
 0x14f   : > { %v735_v5 = vpop.f32.mrf.mxu3 }
 0x150   : > { %v798_v6 = vadd.f32 %v797_v4, %v735_v5  ;;  %v890_v12 = vrot.slane %v888_v9, 7  ;;  %v896_v13 = vrot.slane %v888_v9, 1 }
 0x152   : > { %v881_v8 = vadd.f32 %v877_v7, %v798_v6 }
 0x154   : > { %v887_v10 = vadd.f32 %v1752_v2, %v881_v8 }
 0x156   : > { %v889_v11 = vmax.f32 %v887_v10, 0.0 }
 0x158   : > { %v891_v14 = vrot.slane %v889_v11, 7  ;;  %v897_v15 = vrot.slane %v889_v11, 1  ;;  %v919_v16 = vpack.c.bf16 %v889_v11, %v888_v9 }
 0x15a   : > { %993 = vmatmul.bf16.vlgmr.msrb.gmra.mxu2 %v919_v16  ;;  %v892_v17 = vsel %vm361_vm0, %v890_v12, %v891_v14  ;;  %v893_v19 = vsel %vm361_vm0, %v891_v14, %v890_v12  ;;  %v898_v20 = vsel %vm372_vm1, %v896_v13, %v897_v15  ;;  %v899_v21 = vsel %vm372_vm1, %v897_v15, %v896_v13 }
 0x15b   : > { %v1602_v22 = vpack.c.bf16 %v892_v17, %v893_v19  ;;  %v1654_v23 = vpack.c.bf16 %v899_v21, %v898_v20 }
 0x15d   : > { %1603 = vmatmul.msk.bf16.vlgmr.msrb.gmra.mxu3 %vm1943_vm5, %v1602_v22  ;;  %1655 = vmatmul.msk.bf16.vlgmr.msra.gmra.mxu0 %vm1947_vm6, %v1654_v23 }
 0x1da   : > { %v1136_v25 = vpop.f32.mrf.mxu0 }
 0x1dd   : > { %v994_v24 = vpop.f32.mrf.mxu2 }
 0x1e0   : > { %v1056_v26 = vpop.f32.mrf.mxu3 }
 0x1e1   : > { %v1057_v27 = vadd.f32 %v1056_v26, %v994_v24 }
 0x1e2   : > { %v1138_v35 = vpop.f32.mrf.mxu0 }
 0x1e3   : > { %v1141_v31 = vadd.f32 %v1136_v25, %v1057_v27 }
 0x1e5   : > { %v1147_v32 = vadd.f32 %v1753_v29, %v1141_v31  ;;  %v996_v45 = vpop.f32.mrf.mxu2 }
 0x1e7   : > { %v1149_v18 = vadd.f32 %v1147_v32, %v2040_v28 }
 0x1e8   : > { %v1058_v33 = vpop.f32.mrf.mxu3 }
 0x1e9   : > { %v1151_v47 = vmax.f32 %v1149_v18, 0.0  ;;  %v1059_v34 = vadd.f32 %v1058_v33, %v996_v45 }
 0x1eb   : > { %1153 = vst [vmem:[%s343_s9] sm:$0xff] %v1151_v47  ;;  %v1142_v36 = vadd.f32 %v1138_v35, %v1059_v34 }
 0x1ed   : > { %v1148_v37 = vadd.f32 %v1753_v29, %v1142_v36 }
 0x1ef   : > { %v1150_v38 = vadd.f32 %v1148_v37, %v2042_v30 }
 0x1f1   : > { %v1152_v39 = vmax.f32 %v1150_v38, 0.0 }
 0x1f3   : > { %1154 = vst [vmem:[%s343_s9 + $0x8] sm:$0xff] %v1152_v39 }
 0x1f4 PF: > { %s19_s27 = sadd.s32 1, %s1779_s27  }
 0x1f5   : > { %p16_p7 = scmp.ge.s32.totalorder %s19_s27, 4  }
 0x1f7   :  { %18 = sbr.rel (!%p16_p7) target bundleno = 1 (0x1), region = 96 }
 0x1fc   :  { %1177 = vsyncpa [#allocation3], 1 }
 0x1fd   :  { %1179 = vsyncpa [#allocation3 + $0x1], 1 }

</bundles_post_ra>
